<compile_context>
chip_gen: v5e
topology: v5e:2x2
jax: 0.10.0
libtpu: 0.0.40
codegen_flags: <defaults>
</compile_context>

<pallas_src>
import jax
import jax.numpy as jnp
import numpy as np
from jax.experimental import pallas as pl
from jax.experimental.pallas import tpu as pltpu

# ----------------------- model hyper-parameters -----------------------
IN_DIM = 32
OUT_DIM = 32
NUM_HEADS = 2
KQ_DIM = 16          # kq_linear_out_dim
C_DIM = 16           # c_linear_out_dim
CGNN_OUT_DIM = OUT_DIM // NUM_HEADS   # merge == 'linear'

NTYPES = ('a', 'b')
# (src_ntype, etype, dst_ntype) — fixed synthetic heterograph schema
CANONICAL_ETYPES = (('a', 'ab', 'b'), ('b', 'bb', 'b'), ('b', 'ba', 'a'))
N_NODES = {'a': 8, 'b': 8}
NODE_OFFSET = {'a': 0, 'b': N_NODES['a']}
N_TOTAL = N_NODES['a'] + N_NODES['b']
NEG_INF = -1e30


def _full_spec(shape):
    nd = len(shape)
    return pl.BlockSpec(shape, lambda i, _nd=nd: (0,) * _nd)


# ----------------------------- fused Pallas kernel -----------------------------

def _fused_cgnn_kernel(h_ref, hT_ref, mask_ref, mboth_ref, wfold_ref, vpack_ref, o_ref):
    h_all = h_ref[...]                        # (16, 32)  nodes: a = 0..7, b = 8..15
    hT = hT_ref[...]                          # (32, 16)
    vpack = vpack_ref[...]                    # (8, 32): rows 0-1 vdst, 2-3 vsrc, 4 fused bias

    # head-invariant masks, computed once (review: hoist out of head loop)
    mask_c = mask_ref[0] > 0.5                # (16,16) merged 'ab' + 'ba' (disjoint dst rows)
    mask_bb = mask_ref[1] > 0.5               # (16,16) 'bb'

    na = N_NODES['a']
    # graph aggregation (mean) per node type — stays in vregs
    gf_a = jnp.mean(h_all[0:na, :], axis=0, keepdims=True)          # (1, 32)
    gf_b = jnp.mean(h_all[na:, :], axis=0, keepdims=True)           # (1, 32)
    gf2 = jnp.concatenate([gf_a, gf_b], axis=0)                      # (2, 32)

    # ALL heads' graph-attention bilinear forms in ONE matmul: (2,32)@(32,64) -> (2,64)
    GM = jnp.dot(gf2, mboth_ref[...], preferred_element_type=jnp.float32)
    # ALL heads' src-side context scores in ONE matmul: (2,32)@(32,16) -> (2,16)
    SS = jnp.dot(vpack[2:4, :], hT, preferred_element_type=jnp.float32)

    # per-row g selector: rows of dst ntype 'b' (>= na) take g_ab in the merged pass,
    # rows of dst 'a' take 1 (single incoming etype -> softmax == 1)
    row_ids = jax.lax.broadcasted_iota(jnp.int32, (N_TOTAL, 1), 0)
    is_b_row = row_ids >= na

    inv_sqrt_kq = 1.0 / (KQ_DIM ** 0.5)
    h_new_heads = []

    for hd in range(NUM_HEADS):
        # ---- graph-level attention: softmax over etypes sharing dst ntype 'b' ----
        gm = GM[:, hd * IN_DIM:(hd + 1) * IN_DIM]                             # (2, 32)
        s_ab = jnp.sum(gm[0:1, :] * gf_b, axis=-1, keepdims=True) * inv_sqrt_kq  # (1,1)
        s_bb = jnp.sum(gm[1:2, :] * gf_b, axis=-1, keepdims=True) * inv_sqrt_kq  # (1,1)
        m = jnp.maximum(s_ab, s_bb)
        e_ab = jnp.exp(s_ab - m)
        e_bb = jnp.exp(s_bb - m)
        inv_den = pl.reciprocal(e_ab + e_bb, approx=True)
        g_ab = e_ab * inv_den                                                  # (1,1)
        g_bb = e_bb * inv_den                                                  # (1,1)

        # ---- per-edge context attention scores for ALL (dst, src) pairs ----
        # c_A[d,s] = h[d]·(c_w^T a_dst) + h[s]·(c_w^T a_src)
        s_dst = jnp.sum(h_all * vpack[hd:hd + 1, :], axis=-1, keepdims=True)   # (16,1)
        e_all = s_dst + SS[hd:hd + 1, :]                                       # (16,16)
        e_all = jnp.where(e_all >= 0, e_all, 0.01 * e_all)                     # leaky_relu

        # masked softmax, pass 1: merged 'ab'(+g_ab) and 'ba'(g=1) — disjoint dst rows
        e1 = jnp.where(mask_c, e_all, NEG_INF)
        p1 = jnp.where(mask_c, jnp.exp(e1 - jnp.max(e1, axis=-1, keepdims=True)), 0.0)
        a1 = p1 * pl.reciprocal(
            jnp.maximum(jnp.sum(p1, axis=-1, keepdims=True), 1e-30), approx=True)
        # masked softmax, pass 2: 'bb' (rows 0..7 fully masked -> alpha row == 0)
        e2 = jnp.where(mask_bb, e_all, NEG_INF)
        p2 = jnp.where(mask_bb, jnp.exp(e2 - jnp.max(e2, axis=-1, keepdims=True)), 0.0)
        a2 = p2 * pl.reciprocal(
            jnp.maximum(jnp.sum(p2, axis=-1, keepdims=True), 1e-30), approx=True)

        # fold g_A into the (16,16) alpha, then ONE aggregation matmul per head
        scale1 = jnp.where(is_b_row, g_ab, 1.0)                                # (16,1)
        alpha = scale1 * a1 + g_bb * a2                                        # (16,16)
        h_new_heads.append(
            jnp.dot(alpha, h_all, preferred_element_type=jnp.float32))         # (16,32)

    # per-head fc + linear merge, pre-folded on host:  (16,64) @ (64,32) + bias
    h_cat = jnp.concatenate(h_new_heads, axis=-1)                              # (16,64)
    o_ref[...] = (jnp.dot(h_cat, wfold_ref[...], preferred_element_type=jnp.float32)
                  + vpack[4:5, :])


# ----------------------------- parameters -----------------------------

def xavier_normal(key, shape):
    fan_out, fan_in = shape
    std = (2.0 / (fan_in + fan_out)) ** 0.5
    return std * jax.random.normal(key, shape, dtype=jnp.float32)


def init_params(key):
    heads = []
    for _ in range(NUM_HEADS):
        key, *ks = jax.random.split(key, 7)
        heads.append(dict(
            k_w=xavier_normal(ks[0], (KQ_DIM, IN_DIM)),
            q_w=xavier_normal(ks[1], (KQ_DIM, IN_DIM)),
            c_w=xavier_normal(ks[2], (C_DIM, IN_DIM)),
            attn_w=xavier_normal(ks[3], (1, 2 * C_DIM)),
            fc_w=xavier_normal(ks[4], (CGNN_OUT_DIM, IN_DIM)),
            fc_b=0.01 * jax.random.normal(ks[5], (CGNN_OUT_DIM,), dtype=jnp.float32),
        ))
    key, k1, k2 = jax.random.split(key, 3)
    return dict(heads=heads,
                merge_w=xavier_normal(k1, (OUT_DIM, OUT_DIM)),
                merge_b=0.01 * jax.random.normal(k2, (OUT_DIM,), dtype=jnp.float32))


# --------------------- one-time host packing (hoisted out of forward) ---------------------

def pack_params(params):
    """Fold c_linear into attention vectors, k/q into a bilinear form, fc+merge into one
    weight/bias.  Runs ONCE (not in the per-forward path)."""
    heads = params['heads']
    mwT = params['merge_w'].T                                              # (32, 32)
    # M_h = k_w^T @ q_w so that  s_et = gf_src @ M_h @ gf_dst^T / sqrt(KQ)
    mboth = jnp.concatenate([hp['k_w'].T @ hp['q_w'] for hp in heads], axis=1)   # (32, 64)
    # W_h = fc_w^T @ merge_w^T[h*16:(h+1)*16, :] ; stacked -> (64, 32)
    wfold = jnp.concatenate(
        [hp['fc_w'].T @ mwT[i * CGNN_OUT_DIM:(i + 1) * CGNN_OUT_DIM, :]
         for i, hp in enumerate(heads)], axis=0)
    bfold = sum(hp['fc_b'] @ mwT[i * CGNN_OUT_DIM:(i + 1) * CGNN_OUT_DIM, :]
                for i, hp in enumerate(heads)) + params['merge_b']         # (32,)
    vpack = jnp.zeros((8, IN_DIM), jnp.float32)
    for i, hp in enumerate(heads):
        vpack = vpack.at[i].set(hp['attn_w'][0, C_DIM:] @ hp['c_w'])       # vdst_h
        vpack = vpack.at[NUM_HEADS + i].set(hp['attn_w'][0, :C_DIM] @ hp['c_w'])  # vsrc_h
    vpack = vpack.at[2 * NUM_HEADS].set(bfold)
    return dict(mboth=mboth, wfold=wfold, vpack=vpack)


def pack_graph(adj):
    """Embed per-etype adjacency into two global (16,16) masks.  'ab' and 'ba' have
    disjoint dst rows, so their per-row softmaxes can share one pass (group 0);
    'bb' gets its own pass (group 1).  Runs ONCE for a static graph."""
    group = {'ab': 0, 'ba': 0, 'bb': 1}
    masks = np.zeros((2, N_TOTAL, N_TOTAL), np.float32)
    for (src, et, dst) in CANONICAL_ETYPES:
        do, so = NODE_OFFSET[dst], NODE_OFFSET[src]
        masks[group[et], do:do + N_NODES[dst], so:so + N_NODES[src]] = np.asarray(adj[et])
    return jnp.asarray(masks)


# ----------------------------- forward (single fused pallas_call) -----------------------------

@jax.jit
def multihead_forward(packed, masks, h):
    h_all = jnp.concatenate([jnp.asarray(h[nt], jnp.float32) for nt in NTYPES], axis=0)  # (16,32)
    hT = h_all.T                                                                          # (32,16)

    args = (h_all, hT, masks, packed['mboth'], packed['wfold'], packed['vpack'])
    out_all = pl.pallas_call(
        _fused_cgnn_kernel,
        grid=(1,),
        in_specs=[_full_spec(a.shape) for a in args],
        out_specs=_full_spec((N_TOTAL, OUT_DIM)),
        out_shape=jax.ShapeDtypeStruct((N_TOTAL, OUT_DIM), jnp.float32),
        compiler_params=pltpu.CompilerParams(dimension_semantics=("arbitrary",)),
    )(*args)

    return {nt: out_all[NODE_OFFSET[nt]:NODE_OFFSET[nt] + N_NODES[nt]] for nt in NTYPES}


# ----------------------------- pure-JAX reference -----------------------------

def graph_attention_scores(q_h, k_h):
    g_a = {}
    for q_dst in NTYPES:
        ets, scores = [], []
        for (src, et, dst) in CANONICAL_ETYPES:
            if dst != q_dst:
                continue
            ets.append(et)
            scores.append(jnp.sum(k_h[src] * q_h[q_dst]) / (KQ_DIM ** 0.5))
        att = jax.nn.softmax(jnp.stack(scores))
        for i, et in enumerate(ets):
            g_a[et] = att[i]
    return g_a


def _ref_linear(x, w, b=None):
    y = x @ w.T
    return y if b is None else y + b


def _ref_attn_agg(c_dst, c_src, a_dst, a_src, h_src, mask, g_a):
    c_a = (c_dst @ a_dst[:, None]) + (c_src @ a_src[:, None]).T
    e = jnp.where(c_a >= 0, c_a, 0.01 * c_a)
    e = jnp.where(mask > 0.5, e, NEG_INF)
    p = jnp.where(mask > 0.5, jnp.exp(e - jnp.max(e, axis=-1, keepdims=True)), 0.0)
    alpha = p / jnp.maximum(jnp.sum(p, axis=-1, keepdims=True), 1e-30)
    return g_a * (alpha @ h_src)


def _ref_head(p, h, adj):
    gf = {nt: jnp.mean(h[nt], axis=0) for nt in NTYPES}
    c_h = {nt: _ref_linear(h[nt], p['c_w']) for nt in NTYPES}
    q_h = {nt: _ref_linear(gf[nt], p['q_w']) for nt in NTYPES}
    k_h = {nt: _ref_linear(gf[nt], p['k_w']) for nt in NTYPES}
    g_a = graph_attention_scores(q_h, k_h)
    a_src = p['attn_w'][0, :C_DIM]
    a_dst = p['attn_w'][0, C_DIM:]
    h_new = {nt: jnp.zeros((h[nt].shape[0], IN_DIM), jnp.float32) for nt in NTYPES}
    for (src, et, dst) in CANONICAL_ETYPES:
        h_new[dst] = h_new[dst] + _ref_attn_agg(
            c_h[dst], c_h[src], a_dst, a_src, h[src], adj[et], g_a[et])
    return {nt: _ref_linear(h_new[nt], p['fc_w'], p['fc_b']) for nt in NTYPES}


def _ref_multihead(params, h, adj):
    head_outs = [_ref_head(hp, h, adj) for hp in params['heads']]
    return {nt: _ref_linear(jnp.concatenate([ho[nt] for ho in head_outs], axis=1),
                            params['merge_w'], params['merge_b'])
            for nt in NTYPES}


# ----------------------------- main -----------------------------

if __name__ == "__main__":
    key = jax.random.PRNGKey(0)
    kp, ka, kb = jax.random.split(key, 3)
    params = init_params(kp)
    h = {'a': jax.random.normal(ka, (N_NODES['a'], IN_DIM), dtype=jnp.float32),
         'b': jax.random.normal(kb, (N_NODES['b'], IN_DIM), dtype=jnp.float32)}
    # dense adjacency masks per edge type: adj[etype][dst, src] = 1 iff edge src->dst exists
    adj = {
        'ab': jnp.ones((N_NODES['b'], N_NODES['a']), jnp.float32),
        'bb': jnp.ones((N_NODES['b'], N_NODES['b']), jnp.float32)
              - jnp.eye(N_NODES['b'], dtype=jnp.float32),
        'ba': jnp.ones((N_NODES['a'], N_NODES['b']), jnp.float32),
    }

    # one-time packing (outside the per-forward path)
    packed = {k: jax.block_until_ready(v) for k, v in pack_params(params).items()}
    masks = jax.block_until_ready(pack_graph(adj))

    out = multihead_forward(packed, masks, h)
    out = {nt: jax.block_until_ready(v) for nt, v in out.items()}

    ref = _ref_multihead(params, h, adj)
    for nt in NTYPES:
        assert out[nt].shape == (N_NODES[nt], OUT_DIM)
        # slightly looser than before to accommodate pl.reciprocal(approx=True)
        np.testing.assert_allclose(np.asarray(out[nt]), np.asarray(ref[nt]),
                                   rtol=1e-2, atol=3e-3)
    print("KERNEL_OK")
</pallas_src>

<mosaic_0001>
module attributes {stable_mosaic.version = 11 : i64} {
  func.func @_fused_cgnn_kernel(%arg0: i32, %arg1: memref<16x32xf32, #tpu.memory_space<vmem>>, %arg2: memref<32x16xf32, #tpu.memory_space<vmem>>, %arg3: memref<2x16x16xf32, #tpu.memory_space<vmem>>, %arg4: memref<32x64xf32, #tpu.memory_space<vmem>>, %arg5: memref<64x32xf32, #tpu.memory_space<vmem>>, %arg6: memref<8x32xf32, #tpu.memory_space<vmem>>, %arg7: memref<16x32xf32, #tpu.memory_space<vmem>>) attributes {dimension_semantics = [#tpu.dimension_semantics<arbitrary>], iteration_bounds = array<i64: 1>, scalar_prefetch = 0 : i64, scratch_operands = 0 : i64, tpu.core_type = #tpu.core_type<tc>, window_params = [{pipeline_mode = #tpu.pipeline_mode<synchronous>, transform_indices = @transform_0, window_bounds = array<i64: 16, 32>}, {pipeline_mode = #tpu.pipeline_mode<synchronous>, transform_indices = @transform_1, window_bounds = array<i64: 32, 16>}, {pipeline_mode = #tpu.pipeline_mode<synchronous>, transform_indices = @transform_2, window_bounds = array<i64: 2, 16, 16>}, {pipeline_mode = #tpu.pipeline_mode<synchronous>, transform_indices = @transform_3, window_bounds = array<i64: 32, 64>}, {pipeline_mode = #tpu.pipeline_mode<synchronous>, transform_indices = @transform_4, window_bounds = array<i64: 64, 32>}, {pipeline_mode = #tpu.pipeline_mode<synchronous>, transform_indices = @transform_5, window_bounds = array<i64: 8, 32>}, {pipeline_mode = #tpu.pipeline_mode<synchronous>, transform_indices = @transform_6, window_bounds = array<i64: 16, 32>}]} {
    %c0 = arith.constant 0 : index
    %c0_0 = arith.constant 0 : index
    %0 = vector.load %arg1[%c0, %c0_0] : memref<16x32xf32, #tpu.memory_space<vmem>>, vector<16x32xf32>
    %c0_1 = arith.constant 0 : index
    %c0_2 = arith.constant 0 : index
    %1 = vector.load %arg2[%c0_1, %c0_2] : memref<32x16xf32, #tpu.memory_space<vmem>>, vector<32x16xf32>
    %c0_3 = arith.constant 0 : index
    %c0_4 = arith.constant 0 : index
    %2 = vector.load %arg6[%c0_3, %c0_4] : memref<8x32xf32, #tpu.memory_space<vmem>>, vector<8x32xf32>
    %c0_5 = arith.constant 0 : index
    %c0_6 = arith.constant 0 : index
    %c0_7 = arith.constant 0 : index
    %3 = vector.load %arg3[%c0_5, %c0_6, %c0_7] : memref<2x16x16xf32, #tpu.memory_space<vmem>>, vector<1x16x16xf32>
    %4 = vector.shape_cast %3 : vector<1x16x16xf32> to vector<16x16xf32>
    %cst = arith.constant 5.000000e-01 : f32
    %5 = vector.broadcast %cst : f32 to vector<16x16xf32>
    %6 = arith.cmpf ogt, %4, %5 : vector<16x16xf32>
    %c1 = arith.constant 1 : index
    %c0_8 = arith.constant 0 : index
    %c0_9 = arith.constant 0 : index
    %7 = vector.load %arg3[%c1, %c0_8, %c0_9] : memref<2x16x16xf32, #tpu.memory_space<vmem>>, vector<1x16x16xf32>
    %8 = vector.shape_cast %7 : vector<1x16x16xf32> to vector<16x16xf32>
    %cst_10 = arith.constant 5.000000e-01 : f32
    %9 = vector.broadcast %cst_10 : f32 to vector<16x16xf32>
    %10 = arith.cmpf ogt, %8, %9 : vector<16x16xf32>
    %11 = vector.extract_strided_slice %0 {offsets = [0, 0], sizes = [8, 32], strides = [1, 1]} : vector<16x32xf32> to vector<8x32xf32>
    %cst_11 = arith.constant dense<0.000000e+00> : vector<32xf32>
    %12 = vector.multi_reduction <add>, %11, %cst_11 [0] : vector<8x32xf32> to vector<32xf32>
    %13 = vector.shape_cast %12 : vector<32xf32> to vector<1x32xf32>
    %cst_12 = arith.constant 8.000000e+00 : f32
    %14 = vector.broadcast %cst_12 : f32 to vector<1x32xf32>
    %15 = arith.divf %13, %14 : vector<1x32xf32>
    %16 = vector.extract_strided_slice %0 {offsets = [8, 0], sizes = [8, 32], strides = [1, 1]} : vector<16x32xf32> to vector<8x32xf32>
    %cst_13 = arith.constant dense<0.000000e+00> : vector<32xf32>
    %17 = vector.multi_reduction <add>, %16, %cst_13 [0] : vector<8x32xf32> to vector<32xf32>
    %18 = vector.shape_cast %17 : vector<32xf32> to vector<1x32xf32>
    %cst_14 = arith.constant 8.000000e+00 : f32
    %19 = vector.broadcast %cst_14 : f32 to vector<1x32xf32>
    %20 = arith.divf %18, %19 : vector<1x32xf32>
    %21 = tpu.concatenate %15, %20 in 0 : vector<1x32xf32>, vector<1x32xf32> -> vector<2x32xf32>
    %c0_15 = arith.constant 0 : index
    %c0_16 = arith.constant 0 : index
    %22 = vector.load %arg4[%c0_15, %c0_16] : memref<32x64xf32, #tpu.memory_space<vmem>>, vector<32x64xf32>
    %cst_17 = arith.constant dense<0.000000e+00> : vector<2x64xf32>
    %23 = tpu.matmul %21, %22, %cst_17 {dimension_numbers = #tpu.dot_dimension_numbers<[1], [0], [0], [1], [0, 0, 1, 1], [], []>} : vector<2x32xf32>, vector<32x64xf32>, vector<2x64xf32> -> vector<2x64xf32>
    %24 = vector.extract_strided_slice %2 {offsets = [2, 0], sizes = [2, 32], strides = [1, 1]} : vector<8x32xf32> to vector<2x32xf32>
    %cst_18 = arith.constant dense<0.000000e+00> : vector<2x16xf32>
    %25 = tpu.matmul %24, %1, %cst_18 {dimension_numbers = #tpu.dot_dimension_numbers<[1], [0], [0], [1], [0, 0, 1, 1], [], []>} : vector<2x32xf32>, vector<32x16xf32>, vector<2x16xf32> -> vector<2x16xf32>
    %26 = tpu.iota {dimensions = array<i32: 0>} : vector<16x1xi32>
    %c8_i32 = arith.constant 8 : i32
    %27 = vector.broadcast %c8_i32 : i32 to vector<16x1xi32>
    %28 = arith.cmpi sge, %26, %27 : vector<16x1xi32>
    %29 = vector.extract_strided_slice %23 {offsets = [0, 0], sizes = [2, 32], strides = [1, 1]} : vector<2x64xf32> to vector<2x32xf32>
    %30 = vector.extract_strided_slice %29 {offsets = [0, 0], sizes = [1, 32], strides = [1, 1]} : vector<2x32xf32> to vector<1x32xf32>
    %31 = arith.mulf %30, %20 : vector<1x32xf32>
    %cst_19 = arith.constant dense<0.000000e+00> : vector<1xf32>
    %32 = vector.multi_reduction <add>, %31, %cst_19 [1] : vector<1x32xf32> to vector<1xf32>
    %33 = vector.shape_cast %32 : vector<1xf32> to vector<1x1xf32>
    %cst_20 = arith.constant 2.500000e-01 : f32
    %34 = vector.broadcast %cst_20 : f32 to vector<1x1xf32>
    %35 = arith.mulf %33, %34 : vector<1x1xf32>
    %36 = vector.extract_strided_slice %29 {offsets = [1, 0], sizes = [1, 32], strides = [1, 1]} : vector<2x32xf32> to vector<1x32xf32>
    %37 = arith.mulf %36, %20 : vector<1x32xf32>
    %cst_21 = arith.constant dense<0.000000e+00> : vector<1xf32>
    %38 = vector.multi_reduction <add>, %37, %cst_21 [1] : vector<1x32xf32> to vector<1xf32>
    %39 = vector.shape_cast %38 : vector<1xf32> to vector<1x1xf32>
    %cst_22 = arith.constant 2.500000e-01 : f32
    %40 = vector.broadcast %cst_22 : f32 to vector<1x1xf32>
    %41 = arith.mulf %39, %40 : vector<1x1xf32>
    %42 = arith.maximumf %35, %41 : vector<1x1xf32>
    %43 = arith.subf %35, %42 : vector<1x1xf32>
    %44 = math.exp %43 : vector<1x1xf32>
    %45 = arith.subf %41, %42 : vector<1x1xf32>
    %46 = math.exp %45 : vector<1x1xf32>
    %47 = arith.addf %44, %46 : vector<1x1xf32>
    %48 = tpu.reciprocal %47 {approx = true} : vector<1x1xf32> -> vector<1x1xf32>
    %49 = arith.mulf %44, %48 : vector<1x1xf32>
    %50 = arith.mulf %46, %48 : vector<1x1xf32>
    %51 = vector.extract_strided_slice %2 {offsets = [0, 0], sizes = [1, 32], strides = [1, 1]} : vector<8x32xf32> to vector<1x32xf32>
    %52 = vector.broadcast %51 : vector<1x32xf32> to vector<16x32xf32>
    %53 = arith.mulf %0, %52 : vector<16x32xf32>
    %cst_23 = arith.constant dense<0.000000e+00> : vector<16xf32>
    %54 = vector.multi_reduction <add>, %53, %cst_23 [1] : vector<16x32xf32> to vector<16xf32>
    %55 = vector.shape_cast %54 : vector<16xf32> to vector<16x1xf32>
    %56 = vector.extract_strided_slice %25 {offsets = [0, 0], sizes = [1, 16], strides = [1, 1]} : vector<2x16xf32> to vector<1x16xf32>
    %57 = vector.broadcast %55 : vector<16x1xf32> to vector<16x16xf32>
    %58 = vector.broadcast %56 : vector<1x16xf32> to vector<16x16xf32>
    %59 = arith.addf %57, %58 : vector<16x16xf32>
    %cst_24 = arith.constant 0.000000e+00 : f32
    %60 = vector.broadcast %cst_24 : f32 to vector<16x16xf32>
    %61 = arith.cmpf oge, %59, %60 : vector<16x16xf32>
    %cst_25 = arith.constant 0.00999999977 : f32
    %62 = vector.broadcast %cst_25 : f32 to vector<16x16xf32>
    %63 = arith.mulf %62, %59 : vector<16x16xf32>
    %64 = arith.select %61, %59, %63 : vector<16x16xi1>, vector<16x16xf32>
    %cst_26 = arith.constant -1.000000e+30 : f32
    %65 = vector.broadcast %cst_26 : f32 to vector<16x16xf32>
    %66 = arith.select %6, %64, %65 : vector<16x16xi1>, vector<16x16xf32>
    %cst_27 = arith.constant dense<0xFF800000> : vector<16xf32>
    %67 = vector.multi_reduction <maximumf>, %66, %cst_27 [1] : vector<16x16xf32> to vector<16xf32>
    %68 = vector.shape_cast %67 : vector<16xf32> to vector<16x1xf32>
    %69 = vector.broadcast %68 : vector<16x1xf32> to vector<16x16xf32>
    %70 = arith.subf %66, %69 : vector<16x16xf32>
    %71 = math.exp %70 : vector<16x16xf32>
    %cst_28 = arith.constant 0.000000e+00 : f32
    %72 = vector.broadcast %cst_28 : f32 to vector<16x16xf32>
    %73 = arith.select %6, %71, %72 : vector<16x16xi1>, vector<16x16xf32>
    %cst_29 = arith.constant dense<0.000000e+00> : vector<16xf32>
    %74 = vector.multi_reduction <add>, %73, %cst_29 [1] : vector<16x16xf32> to vector<16xf32>
    %75 = vector.shape_cast %74 : vector<16xf32> to vector<16x1xf32>
    %cst_30 = arith.constant 1.000000e-30 : f32
    %76 = vector.broadcast %cst_30 : f32 to vector<16x1xf32>
    %77 = arith.maximumf %75, %76 : vector<16x1xf32>
    %78 = tpu.reciprocal %77 {approx = true} : vector<16x1xf32> -> vector<16x1xf32>
    %79 = vector.broadcast %78 : vector<16x1xf32> to vector<16x16xf32>
    %80 = arith.mulf %73, %79 : vector<16x16xf32>
    %cst_31 = arith.constant -1.000000e+30 : f32
    %81 = vector.broadcast %cst_31 : f32 to vector<16x16xf32>
    %82 = arith.select %10, %64, %81 : vector<16x16xi1>, vector<16x16xf32>
    %cst_32 = arith.constant dense<0xFF800000> : vector<16xf32>
    %83 = vector.multi_reduction <maximumf>, %82, %cst_32 [1] : vector<16x16xf32> to vector<16xf32>
    %84 = vector.shape_cast %83 : vector<16xf32> to vector<16x1xf32>
    %85 = vector.broadcast %84 : vector<16x1xf32> to vector<16x16xf32>
    %86 = arith.subf %82, %85 : vector<16x16xf32>
    %87 = math.exp %86 : vector<16x16xf32>
    %cst_33 = arith.constant 0.000000e+00 : f32
    %88 = vector.broadcast %cst_33 : f32 to vector<16x16xf32>
    %89 = arith.select %10, %87, %88 : vector<16x16xi1>, vector<16x16xf32>
    %cst_34 = arith.constant dense<0.000000e+00> : vector<16xf32>
    %90 = vector.multi_reduction <add>, %89, %cst_34 [1] : vector<16x16xf32> to vector<16xf32>
    %91 = vector.shape_cast %90 : vector<16xf32> to vector<16x1xf32>
    %cst_35 = arith.constant 1.000000e-30 : f32
    %92 = vector.broadcast %cst_35 : f32 to vector<16x1xf32>
    %93 = arith.maximumf %91, %92 : vector<16x1xf32>
    %94 = tpu.reciprocal %93 {approx = true} : vector<16x1xf32> -> vector<16x1xf32>
    %95 = vector.broadcast %94 : vector<16x1xf32> to vector<16x16xf32>
    %96 = arith.mulf %89, %95 : vector<16x16xf32>
    %cst_36 = arith.constant 1.000000e+00 : f32
    %97 = vector.shape_cast %49 : vector<1x1xf32> to vector<1x1xf32>
    %98 = vector.broadcast %97 : vector<1x1xf32> to vector<16x1xf32>
    %99 = vector.broadcast %cst_36 : f32 to vector<16x1xf32>
    %100 = arith.select %28, %98, %99 : vector<16x1xi1>, vector<16x1xf32>
    %101 = vector.broadcast %100 : vector<16x1xf32> to vector<16x16xf32>
    %102 = arith.mulf %101, %80 : vector<16x16xf32>
    %103 = vector.broadcast %50 : vector<1x1xf32> to vector<16x16xf32>
    %104 = arith.mulf %103, %96 : vector<16x16xf32>
    %105 = arith.addf %102, %104 : vector<16x16xf32>
    %cst_37 = arith.constant dense<0.000000e+00> : vector<16x32xf32>
    %106 = tpu.matmul %105, %0, %cst_37 {dimension_numbers = #tpu.dot_dimension_numbers<[1], [0], [0], [1], [0, 0, 1, 1], [], []>} : vector<16x16xf32>, vector<16x32xf32>, vector<16x32xf32> -> vector<16x32xf32>
    %107 = vector.extract_strided_slice %23 {offsets = [0, 32], sizes = [2, 32], strides = [1, 1]} : vector<2x64xf32> to vector<2x32xf32>
    %108 = vector.extract_strided_slice %107 {offsets = [0, 0], sizes = [1, 32], strides = [1, 1]} : vector<2x32xf32> to vector<1x32xf32>
    %109 = arith.mulf %108, %20 : vector<1x32xf32>
    %cst_38 = arith.constant dense<0.000000e+00> : vector<1xf32>
    %110 = vector.multi_reduction <add>, %109, %cst_38 [1] : vector<1x32xf32> to vector<1xf32>
    %111 = vector.shape_cast %110 : vector<1xf32> to vector<1x1xf32>
    %cst_39 = arith.constant 2.500000e-01 : f32
    %112 = vector.broadcast %cst_39 : f32 to vector<1x1xf32>
    %113 = arith.mulf %111, %112 : vector<1x1xf32>
    %114 = vector.extract_strided_slice %107 {offsets = [1, 0], sizes = [1, 32], strides = [1, 1]} : vector<2x32xf32> to vector<1x32xf32>
    %115 = arith.mulf %114, %20 : vector<1x32xf32>
    %cst_40 = arith.constant dense<0.000000e+00> : vector<1xf32>
    %116 = vector.multi_reduction <add>, %115, %cst_40 [1] : vector<1x32xf32> to vector<1xf32>
    %117 = vector.shape_cast %116 : vector<1xf32> to vector<1x1xf32>
    %cst_41 = arith.constant 2.500000e-01 : f32
    %118 = vector.broadcast %cst_41 : f32 to vector<1x1xf32>
    %119 = arith.mulf %117, %118 : vector<1x1xf32>
    %120 = arith.maximumf %113, %119 : vector<1x1xf32>
    %121 = arith.subf %113, %120 : vector<1x1xf32>
    %122 = math.exp %121 : vector<1x1xf32>
    %123 = arith.subf %119, %120 : vector<1x1xf32>
    %124 = math.exp %123 : vector<1x1xf32>
    %125 = arith.addf %122, %124 : vector<1x1xf32>
    %126 = tpu.reciprocal %125 {approx = true} : vector<1x1xf32> -> vector<1x1xf32>
    %127 = arith.mulf %122, %126 : vector<1x1xf32>
    %128 = arith.mulf %124, %126 : vector<1x1xf32>
    %129 = vector.extract_strided_slice %2 {offsets = [1, 0], sizes = [1, 32], strides = [1, 1]} : vector<8x32xf32> to vector<1x32xf32>
    %130 = vector.broadcast %129 : vector<1x32xf32> to vector<16x32xf32>
    %131 = arith.mulf %0, %130 : vector<16x32xf32>
    %cst_42 = arith.constant dense<0.000000e+00> : vector<16xf32>
    %132 = vector.multi_reduction <add>, %131, %cst_42 [1] : vector<16x32xf32> to vector<16xf32>
    %133 = vector.shape_cast %132 : vector<16xf32> to vector<16x1xf32>
    %134 = vector.extract_strided_slice %25 {offsets = [1, 0], sizes = [1, 16], strides = [1, 1]} : vector<2x16xf32> to vector<1x16xf32>
    %135 = vector.broadcast %133 : vector<16x1xf32> to vector<16x16xf32>
    %136 = vector.broadcast %134 : vector<1x16xf32> to vector<16x16xf32>
    %137 = arith.addf %135, %136 : vector<16x16xf32>
    %cst_43 = arith.constant 0.000000e+00 : f32
    %138 = vector.broadcast %cst_43 : f32 to vector<16x16xf32>
    %139 = arith.cmpf oge, %137, %138 : vector<16x16xf32>
    %cst_44 = arith.constant 0.00999999977 : f32
    %140 = vector.broadcast %cst_44 : f32 to vector<16x16xf32>
    %141 = arith.mulf %140, %137 : vector<16x16xf32>
    %142 = arith.select %139, %137, %141 : vector<16x16xi1>, vector<16x16xf32>
    %cst_45 = arith.constant -1.000000e+30 : f32
    %143 = vector.broadcast %cst_45 : f32 to vector<16x16xf32>
    %144 = arith.select %6, %142, %143 : vector<16x16xi1>, vector<16x16xf32>
    %cst_46 = arith.constant dense<0xFF800000> : vector<16xf32>
    %145 = vector.multi_reduction <maximumf>, %144, %cst_46 [1] : vector<16x16xf32> to vector<16xf32>
    %146 = vector.shape_cast %145 : vector<16xf32> to vector<16x1xf32>
    %147 = vector.broadcast %146 : vector<16x1xf32> to vector<16x16xf32>
    %148 = arith.subf %144, %147 : vector<16x16xf32>
    %149 = math.exp %148 : vector<16x16xf32>
    %cst_47 = arith.constant 0.000000e+00 : f32
    %150 = vector.broadcast %cst_47 : f32 to vector<16x16xf32>
    %151 = arith.select %6, %149, %150 : vector<16x16xi1>, vector<16x16xf32>
    %cst_48 = arith.constant dense<0.000000e+00> : vector<16xf32>
    %152 = vector.multi_reduction <add>, %151, %cst_48 [1] : vector<16x16xf32> to vector<16xf32>
    %153 = vector.shape_cast %152 : vector<16xf32> to vector<16x1xf32>
    %cst_49 = arith.constant 1.000000e-30 : f32
    %154 = vector.broadcast %cst_49 : f32 to vector<16x1xf32>
    %155 = arith.maximumf %153, %154 : vector<16x1xf32>
    %156 = tpu.reciprocal %155 {approx = true} : vector<16x1xf32> -> vector<16x1xf32>
    %157 = vector.broadcast %156 : vector<16x1xf32> to vector<16x16xf32>
    %158 = arith.mulf %151, %157 : vector<16x16xf32>
    %cst_50 = arith.constant -1.000000e+30 : f32
    %159 = vector.broadcast %cst_50 : f32 to vector<16x16xf32>
    %160 = arith.select %10, %142, %159 : vector<16x16xi1>, vector<16x16xf32>
    %cst_51 = arith.constant dense<0xFF800000> : vector<16xf32>
    %161 = vector.multi_reduction <maximumf>, %160, %cst_51 [1] : vector<16x16xf32> to vector<16xf32>
    %162 = vector.shape_cast %161 : vector<16xf32> to vector<16x1xf32>
    %163 = vector.broadcast %162 : vector<16x1xf32> to vector<16x16xf32>
    %164 = arith.subf %160, %163 : vector<16x16xf32>
    %165 = math.exp %164 : vector<16x16xf32>
    %cst_52 = arith.constant 0.000000e+00 : f32
    %166 = vector.broadcast %cst_52 : f32 to vector<16x16xf32>
    %167 = arith.select %10, %165, %166 : vector<16x16xi1>, vector<16x16xf32>
    %cst_53 = arith.constant dense<0.000000e+00> : vector<16xf32>
    %168 = vector.multi_reduction <add>, %167, %cst_53 [1] : vector<16x16xf32> to vector<16xf32>
    %169 = vector.shape_cast %168 : vector<16xf32> to vector<16x1xf32>
    %cst_54 = arith.constant 1.000000e-30 : f32
    %170 = vector.broadcast %cst_54 : f32 to vector<16x1xf32>
    %171 = arith.maximumf %169, %170 : vector<16x1xf32>
    %172 = tpu.reciprocal %171 {approx = true} : vector<16x1xf32> -> vector<16x1xf32>
    %173 = vector.broadcast %172 : vector<16x1xf32> to vector<16x16xf32>
    %174 = arith.mulf %167, %173 : vector<16x16xf32>
    %cst_55 = arith.constant 1.000000e+00 : f32
    %175 = vector.shape_cast %127 : vector<1x1xf32> to vector<1x1xf32>
    %176 = vector.broadcast %175 : vector<1x1xf32> to vector<16x1xf32>
    %177 = vector.broadcast %cst_55 : f32 to vector<16x1xf32>
    %178 = arith.select %28, %176, %177 : vector<16x1xi1>, vector<16x1xf32>
    %179 = vector.broadcast %178 : vector<16x1xf32> to vector<16x16xf32>
    %180 = arith.mulf %179, %158 : vector<16x16xf32>
    %181 = vector.broadcast %128 : vector<1x1xf32> to vector<16x16xf32>
    %182 = arith.mulf %181, %174 : vector<16x16xf32>
    %183 = arith.addf %180, %182 : vector<16x16xf32>
    %cst_56 = arith.constant dense<0.000000e+00> : vector<16x32xf32>
    %184 = tpu.matmul %183, %0, %cst_56 {dimension_numbers = #tpu.dot_dimension_numbers<[1], [0], [0], [1], [0, 0, 1, 1], [], []>} : vector<16x16xf32>, vector<16x32xf32>, vector<16x32xf32> -> vector<16x32xf32>
    %185 = tpu.concatenate %106, %184 in 1 : vector<16x32xf32>, vector<16x32xf32> -> vector<16x64xf32>
    %c0_57 = arith.constant 0 : index
    %c0_58 = arith.constant 0 : index
    %186 = vector.load %arg5[%c0_57, %c0_58] : memref<64x32xf32, #tpu.memory_space<vmem>>, vector<64x32xf32>
    %cst_59 = arith.constant dense<0.000000e+00> : vector<16x32xf32>
    %187 = tpu.matmul %185, %186, %cst_59 {dimension_numbers = #tpu.dot_dimension_numbers<[1], [0], [0], [1], [0, 0, 1, 1], [], []>} : vector<16x64xf32>, vector<64x32xf32>, vector<16x32xf32> -> vector<16x32xf32>
    %188 = vector.extract_strided_slice %2 {offsets = [4, 0], sizes = [1, 32], strides = [1, 1]} : vector<8x32xf32> to vector<1x32xf32>
    %189 = vector.broadcast %188 : vector<1x32xf32> to vector<16x32xf32>
    %190 = arith.addf %187, %189 : vector<16x32xf32>
    %c0_60 = arith.constant 0 : index
    %c0_61 = arith.constant 0 : index
    %191 = vector.load %arg7[%c0_60, %c0_61] : memref<16x32xf32, #tpu.memory_space<vmem>>, vector<16x32xf32>
    tpu.vector_store %arg7[%c0_60, %c0_61], %190 {strides = array<i32>} : memref<16x32xf32, #tpu.memory_space<vmem>>, vector<16x32xf32>,
    return
  }
  func.func @transform_0(%arg0: i32) -> (i32, i32) {
    %c0_i32 = arith.constant 0 : i32
    %c0_i32_0 = arith.constant 0 : i32
    %c0_i32_1 = arith.constant 0 : i32
    return %c0_i32, %c0_i32_0 : i32, i32
  }
  func.func @transform_1(%arg0: i32) -> (i32, i32) {
    %c0_i32 = arith.constant 0 : i32
    %c0_i32_0 = arith.constant 0 : i32
    %c0_i32_1 = arith.constant 0 : i32
    return %c0_i32, %c0_i32_0 : i32, i32
  }
  func.func @transform_2(%arg0: i32) -> (i32, i32, i32) {
    %c0_i32 = arith.constant 0 : i32
    %c0_i32_0 = arith.constant 0 : i32
    %c0_i32_1 = arith.constant 0 : i32
    %c0_i32_2 = arith.constant 0 : i32
    return %c0_i32, %c0_i32_0, %c0_i32_1 : i32, i32, i32
  }
  func.func @transform_3(%arg0: i32) -> (i32, i32) {
    %c0_i32 = arith.constant 0 : i32
    %c0_i32_0 = arith.constant 0 : i32
    %c0_i32_1 = arith.constant 0 : i32
    return %c0_i32, %c0_i32_0 : i32, i32
  }
  func.func @transform_4(%arg0: i32) -> (i32, i32) {
    %c0_i32 = arith.constant 0 : i32
    %c0_i32_0 = arith.constant 0 : i32
    %c0_i32_1 = arith.constant 0 : i32
    return %c0_i32, %c0_i32_0 : i32, i32
  }
  func.func @transform_5(%arg0: i32) -> (i32, i32) {
    %c0_i32 = arith.constant 0 : i32
    %c0_i32_0 = arith.constant 0 : i32
    %c0_i32_1 = arith.constant 0 : i32
    return %c0_i32, %c0_i32_0 : i32, i32
  }
  func.func @transform_6(%arg0: i32) -> (i32, i32) {
    %c0_i32 = arith.constant 0 : i32
    %c0_i32_0 = arith.constant 0 : i32
    %c0_i32_1 = arith.constant 0 : i32
    return %c0_i32, %c0_i32_0 : i32, i32
  }
}

</mosaic_0001>

<bundles_post_ra>
// kernel: multihead_forward.1
= control target key start
LH: loop header
LB: loop body
LE: loop exit
PB: predicated region body
PF: predicated region fallthrough
CT: control target
= control target key end

     0   :  { %vm39_vm0 = vcmask 261120   ;;  %v581_v2 = vmov 8.0   ;;  %vm63_vm2 = vcmask 1040384   ;;  %s582_s15 = smov 32   ;;  %vm127_vm3 = vcmask 254977   ;;  %s859_s3 = inlined_call_operand.vmem [shape: f32[32,64], index: 3, kind: input, shape index: {}]   ;;  %s860_s0 = inlined_call_operand.vmem [shape: f32[16,32], index: 0, kind: input, shape index: {}]   ;;  %s861_s1 = inlined_call_operand.vmem [shape: f32[32,16], index: 1, kind: input, shape index: {}]   ;;  %s862_s5 = inlined_call_operand.vmem [shape: f32[8,32], index: 5, kind: input, shape index: {}]   ;;  %s863_s2 = inlined_call_operand.vmem [shape: f32[2,16,16], index: 2, kind: input, shape index: {}]   ;;  %s864_s4 = inlined_call_operand.vmem [shape: f32[64,32], index: 4, kind: input, shape index: {}]   ;;  %s865_s6 = inlined_call_operand.vmem [shape: f32[16,32], index: 6, kind: output, shape index: {}]  }
   0x1   :  { %v68_v0 = vld [vmem:[%s859_s3 + $0x18] sm:$0xff]  ;;  %v67_v1 = vld [vmem:[%s859_s3 + $0x10] sm:$0xff]  ;;  %535 = vrcp.f32 %v581_v2  ;;  %v630_v3 = vld [vmem:[%s860_s0] sm:$0xff]  ;;  %vm122_vm4 = vcmask 253952   ;;  %vm175_vm7 = vcmask 130048   ;;  %vm469_vm14 = vcmask 523264  }
   0x2   :  { %84 = vmatpush.msra.mxu1 %v68_v0  ;;  %v635_v4 = vld [vmem:[%s860_s0 + $0x8] sm:$0xff]  ;;  %v40_v6 = vsel %vm39_vm0, %v630_v3, 0.0  ;;  %v65_v10 = vld [vmem:[%s859_s3] sm:$0xff]  ;;  %v28_v13 = vld [vmem:[%s861_s1 + $0x18] sm:$0xff] }
   0x3   :  { %v66_v5 = vld [vmem:[%s859_s3 + $0x8] sm:$0xff]  ;;  %v55_v7 = vsel %vm39_vm0, %v635_v4, 0.0  ;;  %441 = vmatpush.msra.mxu3 %v635_v4  ;;  %274 = vmatpush.msra.mxu0 %v635_v4  ;;  %v41_v8 = vrot.slane %v40_v6, 4  ;;  %v27_v18 = vld [vmem:[%s861_s1 + $0x10] sm:$0xff]  ;;  %v25_v26 = vld [vmem:[%s861_s1] sm:$0xff] }
   0x4   :  { %85 = vmatpush.msra.mxu1 %v67_v1  ;;  %v56_v9 = vrot.slane %v55_v7, 4  ;;  %v26_v22 = vld [vmem:[%s861_s1 + $0x8] sm:$0xff]  ;;  %v668_v34 = vld [vmem:[%s862_s5] sm:$0xff]  ;;  %s583_s1 = smov 96   ;;  %v700_v63 = vld [vmem:[%s863_s2 + $0x10] sm:$0xff] }
   0x5   :  { %442 = vmatpush.msra.mxu3 %v630_v3  ;;  %275 = vmatpush.msra.mxu0 %v630_v3  ;;  %v42_v11 = vadd.f32 %v41_v8, %v40_v6  ;;  %v93_v35 = vrot.slane %v668_v34, 2  ;;  %v323_v36 = vperm.slane %v668_v34, 1  ;;  %v684_v52 = vld [vmem:[%s863_s2] sm:$0xff]  ;;  %v155_v53 = vperm.slane %v668_v34, 0  ;;  %v712_v6 = vld [vmem:[%s863_s2 + $0x8] sm:$0xff] }
   0x6   :  { %86 = vmatpush.msra.mxu1 %v66_v5  ;;  %v57_v12 = vadd.f32 %v56_v9, %v55_v7  ;;  %vm32_vm6 = vcmp.gt.f32.partialorder %v684_v52, 0.5  ;;  %vm37_vm8 = vcmp.gt.f32.partialorder %v700_v63, 0.5  ;;  %v717_v7 = vld [vmem:[%s863_s2 + $0x18] sm:$0xff]  ;;  %vm33_vm10 = vcmp.gt.f32.partialorder %v712_v6, 0.5 }
   0x7   :  { %v536_v14 = vpop.eup %535  ;;  %v43_v15 = vrot.slane %v42_v11, 2  ;;  %v324_v37 = vmul.f32 %v323_v36, %v630_v3  ;;  %v325_v39 = vmul.f32 %v323_v36, %v635_v4  ;;  %v156_v58 = vmul.f32 %v155_v53, %v630_v3 }
   0x8   :  { %87 = vmatpush.msra.mxu1 %v65_v10  ;;  %v48_v16 = vmul.f32 8.0, %v536_v14  ;;  %v58_v17 = vrot.slane %v57_v12, 2  ;;  %vm52_vm1 = vweird.f32 %v536_v14  ;;  %v157_v1 = vmul.f32 %v155_v53, %v635_v4 }
   0x9   :  { %v44_v19 = vadd.f32 %v43_v15, %v42_v11  ;;  %v326_v38 = vsel %vm39_vm0, %v324_v37, 0.0  ;;  %v329_v40 = vsel %vm39_vm0, %v325_v39, 0.0  ;;  %v158_v60 = vsel %vm39_vm0, %v156_v58, 0.0 }
   0xa   :  { %108 = vmatpush.msrb.mxu1 %v28_v13  ;;  %v49_v20 = vsub.f32 1.0, %v48_v16  ;;  %v59_v21 = vadd.f32 %v58_v17, %v57_v12  ;;  %327 = vadd.xlane.f32.xlu1 %v326_v38  ;;  %v161_v5 = vsel %vm39_vm0, %v157_v1, 0.0  ;;  %vm38_vm11 = vcmp.gt.f32.partialorder %v717_v7, 0.5 }
   0xb   :  { %v45_v23 = vrot.slane %v44_v19, 1 }
   0xc   :  { %109 = vmatpush.msrb.mxu1 %v27_v18  ;;  %v50_v24 = vmul.f32 %v536_v14, %v49_v20  ;;  %v60_v25 = vrot.slane %v59_v21, 1 }
   0xd   :  { %v46_v27 = vadd.f32 %v45_v23, %v44_v19 }
   0xe   :  { %110 = vmatpush.msrb.mxu1 %v26_v22  ;;  %v51_v28 = vadd.f32 %v536_v14, %v50_v24  ;;  %v61_v29 = vadd.f32 %v60_v25, %v59_v21 }
  0x10   :  { %111 = vmatpush.msrb.mxu1 %v25_v26  ;;  %v53_v30 = vsel %vm52_vm1, %v536_v14, %v51_v28 }
  0x11   :  { %v54_v31 = vmul.f32 %v53_v30, %v46_v27  ;;  %v62_v32 = vmul.f32 %v61_v29, %v53_v30 }
  0x12   :  { %330 = vadd.xlane.f32.xlu1 %v329_v40 }
  0x13   :  { %v64_v33 = vsel %vm63_vm2, %v54_v31, %v62_v32  ;;  %284 = vrot.lane.b32.xlu0 %v62_v32, %s582_s15 }
  0x14   :  { %507 = vmatmul.msk.f32.vlgmr.msra.gmra.mxu1 %vm39_vm0, %v64_v33 }
  0x1c   :  { %508 = vmatmul.msk.f32.vlgmr.msrb.gmra.mxu1 %vm39_vm0, %v93_v35 }
  0x7d   :  { %v328_v49 = vpop.xlane.xlu1 %327 }
  0x85   :  { %v285_v41 = vpop.permute.xlu0 %284  ;;  %v331_v62 = vpop.xlane.xlu1 %330 }
  0x91   :  { %v89_v42 = vpop.f32.mrf.mxu1 }
  0x92   :  { %v287_v43 = vmul.f32 %v285_v41, %v89_v42  ;;  %v121_v44 = vmul.f32 %v89_v42, %v62_v32 }
  0x94   :  { %289 = vrot.lane.b32.xlu0 %v287_v43, %s583_s1  ;;  %v128_v45 = vsel %vm127_vm3, %v121_v44, 0.0  ;;  %v123_v46 = vsel %vm122_vm4, %v121_v44, 0.0 }
  0x95   :  { %129 = vadd.xlane.f32.xlu2 %v128_v45 }
  0x99   :  { %v678_v47 = vpop.f32.mrf.mxu1 }
  0x9a   :  { %v332_v48 = vperm.slane %v678_v47, 1  ;;  %v164_v40 = vperm.slane %v678_v47, 0 }
  0x9c   :  { %v333_v50 = vadd.f32 %v332_v48, %v328_v49  ;;  %v334_v0 = vadd.f32 %v332_v48, %v331_v62  ;;  %v584_v48 = vmov 0  }
  0x9d   :  { %532 = vset.pattern.permute.xlu0 %v584_v48  ;;  %533 = vset.pattern.permute.xlu1 %v584_v48 }
  0x9e   :  { %v337_v51 = vmul.f32 0.01, %v333_v50  ;;  %vm335_vm5 = vcmp.ge.f32.partialorder %v333_v50, 0.0  ;;  %v338_v3 = vmul.f32 0.01, %v334_v0  ;;  %vm336_vm9 = vcmp.ge.f32.partialorder %v334_v0, 0.0  ;;  %534 = vset.pattern.permute.xlu2 %v584_v48 }
  0xa0   :  { %v339_v57 = vsel %vm335_vm5, %v333_v50, %v337_v51  ;;  %v340_v8 = vsel %vm336_vm9, %v334_v0, %v338_v3 }
  0xa1   :  { %v692_v59 = vsel %vm32_vm6, %v339_v57, -1e+30  ;;  %v706_v2 = vsel %vm37_vm8, %v339_v57, -1e+30  ;;  %v725_v9 = vsel %vm33_vm10, %v340_v8, -1e+30 }
  0xa2   :  { %v343_v61 = vsel %vm175_vm7, %v692_v59, -inf  ;;  %v371_v4 = vsel %vm175_vm7, %v706_v2, -inf  ;;  %v729_v10 = vsel %vm38_vm11, %v340_v8, -1e+30  ;;  %v346_v11 = vsel %vm175_vm7, %v725_v9, -inf }
  0xa3   :  { %v374_v12 = vsel %vm175_vm7, %v729_v10, -inf }
  0xbe   :  { %124 = vadd.xlane.f32.xlu0 %v123_v46 }
 0x106   :  { %v290_v54 = vpop.permute.xlu0 %289 }
 0x107   :  { %v292_v55 = vsel %vm122_vm4, %v290_v54, 0.0  ;;  %v296_v56 = vsel %vm127_vm3, %v290_v54, 0.0 }
 0x108   :  { %293 = vadd.xlane.f32.xlu1 %v292_v55  ;;  %297 = vadd.xlane.f32.xlu2 %v296_v56  ;;  %v130_v13 = vpop.xlane.xlu2 %129 }
 0x109   :  { %v131_v14 = vmul.f32 0.25, %v130_v13 }
 0x10b   :  { %v133_v16 = vrot.slane %v131_v14, 1 }
 0x110   :  { %159 = vadd.xlane.f32.xlu2 %v158_v60  ;;  %344 = vmax.xlane.f32.xlu1 %v343_v61 }
 0x118   :  { %372 = vmax.xlane.f32.xlu2 %v371_v4  ;;  %162 = vadd.xlane.f32.xlu1 %v161_v5 }
 0x120   :  { %347 = vmax.xlane.f32.xlu2 %v346_v11  ;;  %375 = vmax.xlane.f32.xlu1 %v374_v12 }
 0x131   :  { %v125_v15 = vpop.xlane.xlu0 %124 }
 0x132   :  { %v126_v17 = vmul.f32 0.25, %v125_v15 }
 0x134   :  { %v135_v18 = vmax.f32 %v126_v17, %v133_v16 }
 0x136   :  { %v136_v19 = vsub.f32 %v126_v17, %v135_v18  ;;  %v140_v20 = vrot.slane %v135_v18, 7 }
 0x138   :  { %v142_v21 = vsub.f32 %v131_v14, %v140_v20  ;;  %v137_v22 = vmul.f32 1.442695, %v136_v19 }
 0x13a   :  { %v143_v23 = vmul.f32 1.442695, %v142_v21 }
 0x13c   :  { %537 = vpow2.f32 %v143_v23 }
 0x13d   :  { %539 = vpow2.f32 %v137_v22 }
 0x142   :  { %v538_v24 = vpop.eup %537 }
 0x143   :  { %v146_v25 = vrot.slane %v538_v24, 1  ;;  %v540_v26 = vpop.eup %539 }
 0x145   :  { %v148_v27 = vadd.f32 %v540_v26, %v146_v25 }
 0x147   :  { %541 = vrcp.f32 %v148_v27 }
 0x14d   :  { %v542_v28 = vpop.eup %541 }
 0x14e   :  { %v152_v29 = vrot.slane %v542_v28, 7  ;;  %v735_v30 = vmul.f32 %v542_v28, %v540_v26 }
 0x150   :  { %v154_v31 = vmul.f32 %v538_v24, %v152_v29  ;;  %v230_v7 = vperm.slane %v735_v30, 0  ;;  %v467_v30 = vld [vmem:[%s864_s4 + $0x38] sm:$0xff] }
 0x151   :  { %484 = vmatpush.msrb.mxu0 %v467_v30  ;;  %515 = vmatpush.msra.mxu2 %v467_v30 }
 0x152   :  { %v246_v32 = vrot.slane %v154_v31, 1 }
 0x154   :  { %523 = vpush %v246_v32 }
 0x17b   :  { %v294_v33 = vpop.xlane.xlu1 %293  ;;  %v298_v35 = vpop.xlane.xlu2 %297 }
 0x17c   :  { %v299_v36 = vmul.f32 0.25, %v298_v35  ;;  %v295_v37 = vmul.f32 0.25, %v294_v33 }
 0x17e   :  { %v301_v38 = vrot.slane %v299_v36, 1 }
 0x180   :  { %v303_v39 = vmax.f32 %v295_v37, %v301_v38 }
 0x182   :  { %v304_v41 = vsub.f32 %v295_v37, %v303_v39  ;;  %v308_v42 = vrot.slane %v303_v39, 7  ;;  %v585_v37 = vmov 1.0  }
 0x183   :  { %v160_v43 = vpop.xlane.xlu2 %159  ;;  %v345_v44 = vpop.xlane.xlu1 %344 }
 0x184   :  { %v310_v45 = vsub.f32 %v299_v36, %v308_v42  ;;  %v165_v46 = vadd.f32 %v164_v40, %v160_v43  ;;  %v305_v49 = vmul.f32 1.442695, %v304_v41  ;;  %v349_v53 = vsub.f32 %v692_v59, %v345_v44 }
 0x185   :  { %s803_s2 = spop %523 }
 0x186   :  { %v311_v50 = vmul.f32 1.442695, %v310_v45  ;;  %v169_v51 = vmul.f32 0.01, %v165_v46  ;;  %vm167_vm12 = vcmp.ge.f32.partialorder %v165_v46, 0.0 }
 0x187   :  { %v351_v56 = vmul.f32 1.442695, %v349_v53 }
 0x188   :  { %543 = vpow2.f32 %v311_v50  ;;  %v171_v54 = vsel %vm167_vm12, %v165_v46, %v169_v51 }
 0x189   :  { %v741_v47 = vsel %vm37_vm8, %v171_v54, -1e+30  ;;  %v745_v55 = vsel %vm32_vm6, %v171_v54, -1e+30  ;;  %545 = vpow2.f32 %v305_v49 }
 0x18a   :  { %v204_v57 = vsel %vm175_vm7, %v741_v47, -inf  ;;  %v176_v58 = vsel %vm175_vm7, %v745_v55, -inf  ;;  %547 = vpow2.f32 %v351_v56 }
 0x18b   :  { %v373_v59 = vpop.xlane.xlu2 %372  ;;  %v163_v60 = vpop.xlane.xlu1 %162  ;;  %205 = vmax.xlane.f32.xlu1 %v204_v57  ;;  %177 = vmax.xlane.f32.xlu2 %v176_v58 }
 0x18c   :  { %v377_v61 = vsub.f32 %v706_v2, %v373_v59  ;;  %v166_v62 = vadd.f32 %v164_v40, %v163_v60 }
 0x18e   :  { %v544_v0 = vpop.eup %543  ;;  %v379_v1 = vmul.f32 1.442695, %v377_v61  ;;  %v170_v3 = vmul.f32 0.01, %v166_v62  ;;  %vm168_vm13 = vcmp.ge.f32.partialorder %v166_v62, 0.0 }
 0x18f   :  { %v314_v5 = vrot.slane %v544_v0, 1  ;;  %v546_v4 = vpop.eup %545 }
 0x190   :  { %549 = vpow2.f32 %v379_v1  ;;  %v172_v8 = vsel %vm168_vm13, %v166_v62, %v170_v3  ;;  %v548_v17 = vpop.eup %547 }
 0x191   :  { %v754_v11 = vsel %vm38_vm11, %v172_v8, -1e+30  ;;  %v174_v12 = vsel %vm33_vm10, %v172_v8, -1e+30  ;;  %v316_v13 = vadd.f32 %v546_v4, %v314_v5  ;;  %v769_v24 = vsel %vm32_vm6, %v548_v17, 0.0 }
 0x192   :  { %v207_v2 = vsel %vm175_vm7, %v754_v11, -inf  ;;  %v179_v14 = vsel %vm175_vm7, %v174_v12, -inf }
 0x193   :  { %v348_v15 = vpop.xlane.xlu2 %347  ;;  %v376_v16 = vpop.xlane.xlu1 %375  ;;  %208 = vmax.xlane.f32.xlu1 %v207_v2  ;;  %180 = vmax.xlane.f32.xlu2 %v179_v14  ;;  %551 = vrcp.f32 %v316_v13 }
 0x194   :  { %v350_v18 = vsub.f32 %v725_v9, %v348_v15  ;;  %v378_v19 = vsub.f32 %v729_v10, %v376_v16  ;;  %v357_v9 = vsel %vm175_vm7, %v769_v24, 0.0 }
 0x196   :  { %v550_v20 = vpop.eup %549  ;;  %v353_v21 = vmul.f32 1.442695, %v350_v18  ;;  %v381_v22 = vmul.f32 1.442695, %v378_v19 }
 0x197   :  { %v765_v23 = vsel %vm37_vm8, %v550_v20, 0.0 }
 0x198   :  { %553 = vpow2.f32 %v353_v21  ;;  %v385_v25 = vsel %vm175_vm7, %v765_v23, 0.0 }
 0x199   :  { %v552_v26 = vpop.eup %551  ;;  %555 = vpow2.f32 %v381_v22  ;;  %386 = vadd.xlane.f32.xlu0 %v385_v25 }
 0x19a   :  { %v320_v10 = vrot.slane %v552_v26, 7  ;;  %v318_v38 = vmul.f32 %v552_v26, %v546_v4 }
 0x19b   :  { %358 = vadd.xlane.f32.xlu2 %v357_v9 }
 0x19c   :  { %v322_v27 = vmul.f32 %v544_v0, %v320_v10  ;;  %v397_v39 = vperm.slane %v318_v38, 0 }
 0x19e   :  { %v554_v28 = vpop.eup %553  ;;  %v413_v29 = vrot.slane %v322_v27, 1 }
 0x19f   :  { %v556_v31 = vpop.eup %555  ;;  %v777_v32 = vsel %vm33_vm10, %v554_v28, 0.0 }
 0x1a0   :  { %525 = vpush %v413_v29  ;;  %v360_v33 = vsel %vm175_vm7, %v777_v32, 0.0  ;;  %v783_v35 = vsel %vm38_vm11, %v556_v31, 0.0 }
 0x1a1   :  { %361 = vadd.xlane.f32.xlu1 %v360_v33  ;;  %v388_v36 = vsel %vm175_vm7, %v783_v35, 0.0 }
 0x1a3   :  { %389 = vadd.xlane.f32.xlu2 %v388_v36 }
 0x1ad   :  { %402 = vperm.xlu0 %532, %v585_v37  }
 0x1ba   :  { %407 = vperm.xlu1 %533, %v397_v39  }
 0x1c2   :  { %235 = vperm.xlu1 %533, %v585_v37   ;;  %v248_v37 = vstv %s803_s2 }
 0x1d1   :  { %s526_s25 = spop %525 }
 0x1d2   :  { %v415_v14 = vstv %s526_s25 }
 0x1fe   :  { %v206_v40 = vpop.xlane.xlu1 %205  ;;  %v178_v41 = vpop.xlane.xlu2 %177 }
 0x1ff   :  { %v182_v42 = vsub.f32 %v745_v55, %v178_v41  ;;  %v210_v43 = vsub.f32 %v741_v47, %v206_v40 }
 0x201   :  { %v184_v44 = vmul.f32 1.442695, %v182_v42  ;;  %v212_v45 = vmul.f32 1.442695, %v210_v43  ;;  %v466_v43 = vld [vmem:[%s864_s4 + $0x30] sm:$0xff] }
 0x202   :  { %516 = vmatpush.msra.mxu2 %v466_v43  ;;  %485 = vmatpush.msrb.mxu0 %v466_v43 }
 0x203   :  { %557 = vpow2.f32 %v184_v44 }
 0x204   :  { %559 = vpow2.f32 %v212_v45  ;;  %v465_v45 = vld [vmem:[%s864_s4 + $0x28] sm:$0xff] }
 0x205   :  { %517 = vmatpush.msra.mxu2 %v465_v45  ;;  %486 = vmatpush.msrb.mxu0 %v465_v45 }
 0x206   :  { %v181_v46 = vpop.xlane.xlu2 %180  ;;  %v209_v56 = vpop.xlane.xlu1 %208 }
 0x207   :  { %v183_v48 = vsub.f32 %v174_v12, %v181_v46  ;;  %v211_v58 = vsub.f32 %v754_v11, %v209_v56 }
 0x209   :  { %v558_v49 = vpop.eup %557  ;;  %v186_v51 = vmul.f32 1.442695, %v183_v48  ;;  %v214_v52 = vmul.f32 1.442695, %v211_v58  ;;  %v464_v48 = vld [vmem:[%s864_s4 + $0x20] sm:$0xff] }
 0x20a   :  { %v791_v50 = vsel %vm32_vm6, %v558_v49, 0.0  ;;  %v560_v55 = vpop.eup %559  ;;  %518 = vmatpush.msra.mxu2 %v464_v48  ;;  %487 = vmatpush.msrb.mxu0 %v464_v48 }
 0x20b   :  { %v190_v54 = vsel %vm175_vm7, %v791_v50, 0.0  ;;  %561 = vpow2.f32 %v186_v51  ;;  %v216_v60 = vsel %vm37_vm8, %v560_v55, 0.0 }
 0x20c   :  { %v387_v53 = vpop.xlane.xlu0 %386  ;;  %191 = vadd.xlane.f32.xlu2 %v190_v54  ;;  %v218_v61 = vsel %vm175_vm7, %v216_v60, 0.0 }
 0x20d   :  { %v391_v57 = vmax.f32 %v387_v53, 1e-30 }
 0x20e   :  { %v359_v47 = vpop.xlane.xlu2 %358 }
 0x20f   :  { %v363_v59 = vmax.f32 %v359_v47, 1e-30  ;;  %563 = vrcp.f32 %v391_v57 }
 0x211   :  { %565 = vrcp.f32 %v363_v59  ;;  %v562_v62 = vpop.eup %561  ;;  %v463_v59 = vld [vmem:[%s864_s4 + $0x18] sm:$0xff] }
 0x212   :  { %567 = vpow2.f32 %v214_v52  ;;  %v801_v3 = vsel %vm33_vm10, %v562_v62, 0.0  ;;  %488 = vmatpush.msrb.mxu0 %v463_v59  ;;  %519 = vmatpush.msra.mxu2 %v463_v59  ;;  %v461_v52 = vld [vmem:[%s864_s4 + $0x8] sm:$0xff] }
 0x213   :  { %v193_v8 = vsel %vm175_vm7, %v801_v3, 0.0 }
 0x214   :  { %219 = vadd.xlane.f32.xlu2 %v218_v61  ;;  %v362_v4 = vpop.xlane.xlu1 %361  ;;  %v460_v61 = vld [vmem:[%s864_s4] sm:$0xff] }
 0x215   :  { %v564_v0 = vpop.eup %563  ;;  %v364_v13 = vmax.f32 %v362_v4, 1e-30 }
 0x216   :  { %v390_v1 = vpop.xlane.xlu2 %389  ;;  %v395_v11 = vmul.f32 %v564_v0, %v765_v23 }
 0x217   :  { %v566_v5 = vpop.eup %565  ;;  %v392_v63 = vmax.f32 %v390_v1, 1e-30 }
 0x218   :  { %v568_v12 = vpop.eup %567  ;;  %v367_v2 = vmul.f32 %v566_v5, %v769_v24  ;;  %v417_v15 = vmul.f32 %v415_v14, %v395_v11 }
 0x219   :  { %569 = vrcp.f32 %v392_v63  ;;  %v217_v17 = vsel %vm38_vm11, %v568_v12, 0.0  ;;  %v468_v63 = vperm.slane %v668_v34, 4 }
 0x21a   :  { %571 = vrcp.f32 %v364_v13  ;;  %v221_v19 = vsel %vm175_vm7, %v217_v17, 0.0 }
 0x21c   :  { %194 = vadd.xlane.f32.xlu2 %v193_v8 }
 0x21f   :  { %v403_v6 = vpop.permute.xlu0 %402  ;;  %v570_v20 = vpop.eup %569 }
 0x220   :  { %v410_v16 = vmul.f32 %v403_v6, %v367_v2  ;;  %v572_v21 = vpop.eup %571  ;;  %v396_v22 = vmul.f32 %v570_v20, %v783_v35 }
 0x221   :  { %v368_v23 = vmul.f32 %v572_v21, %v777_v32 }
 0x222   :  { %v419_v18 = vadd.f32 %v417_v15, %v410_v16  ;;  %v418_v26 = vmul.f32 %v415_v14, %v396_v22 }
 0x224   :  { %511 = vmatmul.msk.f32.vlgmr.msra.gmra.mxu3 %vm175_vm7, %v419_v18  ;;  %222 = vadd.xlane.f32.xlu2 %v221_v19 }
 0x22c   :  { %v408_v24 = vpop.permute.xlu1 %407 }
 0x22d   :  { %v411_v25 = vmul.f32 %v408_v24, %v368_v23 }
 0x22f   :  { %v420_v9 = vadd.f32 %v418_v26, %v411_v25 }
 0x231   :  { %512 = vmatmul.msk.f32.gmra.mxu3 %vm175_vm7, %v420_v9 }
 0x234   :  { %v236_v38 = vpop.permute.xlu1 %235 }
 0x23c   :  { %240 = vperm.xlu2 %534, %v230_v7  }
 0x27f   :  { %v192_v10 = vpop.xlane.xlu2 %191 }
 0x280   :  { %v196_v27 = vmax.f32 %v192_v10, 1e-30 }
 0x282   :  { %573 = vrcp.f32 %v196_v27 }
 0x287   :  { %v220_v28 = vpop.xlane.xlu2 %219 }
 0x288   :  { %v224_v29 = vmax.f32 %v220_v28, 1e-30  ;;  %v574_v31 = vpop.eup %573 }
 0x289   :  { %v200_v32 = vmul.f32 %v574_v31, %v791_v50 }
 0x28a   :  { %575 = vrcp.f32 %v224_v29 }
 0x28b   :  { %v243_v39 = vmul.f32 %v236_v38, %v200_v32 }
 0x28f   :  { %v195_v33 = vpop.xlane.xlu2 %194 }
 0x290   :  { %v576_v35 = vpop.eup %575  ;;  %v197_v41 = vmax.f32 %v195_v33, 1e-30 }
 0x291   :  { %v228_v36 = vmul.f32 %v576_v35, %v216_v60  ;;  %v462_v60 = vld [vmem:[%s864_s4 + $0x10] sm:$0xff] }
 0x292   :  { %577 = vrcp.f32 %v197_v41  ;;  %489 = vmatpush.msrb.mxu0 %v462_v60  ;;  %520 = vmatpush.msra.mxu2 %v462_v60 }
 0x293   :  { %v250_v40 = vmul.f32 %v248_v37, %v228_v36 }
 0x294   :  { %490 = vmatpush.msrb.mxu0 %v461_v52  ;;  %521 = vmatpush.msra.mxu2 %v461_v52 }
 0x295   :  { %v252_v42 = vadd.f32 %v250_v40, %v243_v39 }
 0x296   :  { %491 = vmatpush.msrb.mxu0 %v460_v61  ;;  %522 = vmatpush.msra.mxu2 %v460_v61 }
 0x297   :  { %509 = vmatmul.msk.f32.vlgmr.msra.gmra.mxu0 %vm175_vm7, %v252_v42  ;;  %v223_v44 = vpop.xlane.xlu2 %222 }
 0x298   :  { %v225_v46 = vmax.f32 %v223_v44, 1e-30  ;;  %v578_v49 = vpop.eup %577 }
 0x299   :  { %v201_v53 = vmul.f32 %v578_v49, %v801_v3 }
 0x29a   :  { %579 = vrcp.f32 %v225_v46 }
 0x29f   :  { %v241_v51 = vpop.permute.xlu2 %240 }
 0x2a0   :  { %v580_v50 = vpop.eup %579  ;;  %v244_v55 = vmul.f32 %v241_v51, %v201_v53 }
 0x2a1   :  { %v229_v54 = vmul.f32 %v580_v50, %v217_v17 }
 0x2a3   :  { %v251_v56 = vmul.f32 %v248_v37, %v229_v54 }
 0x2a5   :  { %v253_v47 = vadd.f32 %v251_v56, %v244_v55 }
 0x2a7   :  { %v444_v57 = vpop.f32.mrf.mxu3  ;;  %510 = vmatmul.msk.f32.gmra.mxu0 %vm175_vm7, %v253_v47 }
 0x2a8   :  { %452 = vrot.lane.b32.xlu0 %v444_v57, %s582_s15 }
 0x2b4   :  { %v447_v58 = vpop.f32.mrf.mxu3 }
 0x2b5   :  { %454 = vrot.lane.b32.xlu1 %v447_v58, %s582_s15 }
 0x314   :  { %v277_v62 = vpop.f32.mrf.mxu0 }
 0x31a   :  { %v453_v0 = vpop.permute.xlu0 %452 }
 0x31b   :  { %v458_v1 = vsel %vm39_vm0, %v277_v62, %v453_v0 }
 0x31c   :  { %513 = vmatmul.msk.f32.vlgmr.msrb.gmra.mxu0 %vm469_vm14, %v458_v1 }
 0x324   :  { %v280_v3 = vpop.f32.mrf.mxu0 }
 0x327   :  { %v455_v5 = vpop.permute.xlu1 %454 }
 0x328   :  { %v459_v4 = vsel %vm39_vm0, %v280_v3, %v455_v5 }
 0x329   :  { %514 = vmatmul.msk.f32.vlgmr.msra.gmra.mxu2 %vm469_vm14, %v459_v4 }
 0x399   :  { %v493_v8 = vpop.f32.mrf.mxu0 }
 0x39a   :  { %v494_v11 = vadd.f32 %v493_v8, %v468_v63 }
 0x39c   :  { %499 = vst.msk [vmem:[%s865_s6] sm:$0xff] %vm39_vm0, %v494_v11 }
 0x3ac   :  { %v496_v12 = vpop.f32.mrf.mxu2 }
 0x3ad   :  { %v497_v13 = vadd.f32 %v496_v12, %v468_v63 }
 0x3af   :  { %500 = vst.msk [vmem:[%s865_s6 + $0x8] sm:$0xff] %vm39_vm0, %v497_v13 }

</bundles_post_ra>
